<compile_context>
chip_gen: v7x
topology: tpu7x:2x2x1
jax: 0.10.0
libtpu: 0.0.40
codegen_flags: <defaults>
</compile_context>

<pallas_src>
import functools

import jax
import jax.numpy as jnp
from jax.experimental import pallas as pl
from jax.experimental.pallas import tpu as pltpu


def _round_up(v, m):
    return ((v + m - 1) // m) * m


def gru_cell_kernel(h_aug_ref, w_ref, out_ref, *, Hp):
    h_aug = h_aug_ref[...]                                        # (Bp, K) f32
    # Single augmented matmul: [g_r | g_z | g_hn | g_in] = h_aug @ W_aug.
    g = jnp.dot(h_aug.astype(w_ref.dtype), w_ref[...],
                preferred_element_type=jnp.float32)               # (Bp, 4*Hp)
    # Static slices at multiples of 128 lanes -> no relayout.
    r = jax.nn.sigmoid(g[:, 0 * Hp:1 * Hp])
    z = jax.nn.sigmoid(g[:, 1 * Hp:2 * Hp])
    n = jnp.tanh(g[:, 3 * Hp:4 * Hp] + r * g[:, 2 * Hp:3 * Hp])
    h = h_aug[:, :Hp]            # lanes >= H carry x / 1 / 0 -> sliced off later
    # (1 - z) * n + z * h  ==  n + z * (h - n)   (one fewer VALU op)
    out_ref[...] = n + z * (h - n)


def prepare_gru_params(w_ih, w_hh, b_ih, b_hh, *, dtype=jnp.float32):
    """One-time host-side prep: fold everything into one (K, 4*Hp) matrix.

    w_ih: (3H, 1), w_hh: (3H, H), b_ih/b_hh: (3H,)  -- PyTorch GRUCell layout.
    NOTE: for large H, dtype=jnp.bfloat16 halves weight VMEM / doubles MXU
    rate (loosen the test tolerance accordingly).
    """
    H = w_hh.shape[1]
    Hp = _round_up(H, 128)
    # Two extra contraction rows are needed (x and the bias "1"); only bump K
    # by a full 128 tile if H is within 2 of a multiple of 128.
    K = Hp if Hp - H >= 2 else Hp + 128

    def block(w_h, w_i_row, b_row):
        """(K, Hp) block: rows 0..H-1 = W_h^T, row H = w_i, row H+1 = bias."""
        blk = jnp.zeros((K, Hp), jnp.float32)
        blk = blk.at[0:H, 0:H].set(jnp.transpose(w_h).astype(jnp.float32))
        blk = blk.at[H, 0:H].set(w_i_row.astype(jnp.float32))
        blk = blk.at[H + 1, 0:H].set(b_row.astype(jnp.float32))
        return blk

    zH = jnp.zeros((H,), jnp.float32)
    zHH = jnp.zeros((H, H), jnp.float32)
    # PyTorch gate order: r, z, n.
    r_blk = block(w_hh[0:H], w_ih[0:H, 0], b_ih[0:H] + b_hh[0:H])
    z_blk = block(w_hh[H:2 * H], w_ih[H:2 * H, 0], b_ih[H:2 * H] + b_hh[H:2 * H])
    nh_blk = block(w_hh[2 * H:3 * H], zH, b_hh[2 * H:3 * H])       # r*(h@Whn^T + b_hn)
    ni_blk = block(zHH, w_ih[2 * H:3 * H, 0], b_ih[2 * H:3 * H])   # x*w_in + b_in

    w_aug = jnp.concatenate([r_blk, z_blk, nh_blk, ni_blk], axis=1).astype(dtype)
    return {"w_aug": w_aug}


@jax.jit
def gru_decoder_cell(x, h, params):
    """Single GRUCell step.  x: (B, 1), h: (B, H)  ->  h': (B, H)."""
    w_aug = params["w_aug"]                       # (K, 4*Hp)
    K = w_aug.shape[0]
    Hp = w_aug.shape[1] // 4
    B, H = h.shape
    Bp = _round_up(B, 8)

    # Augmented state: [h | x | 1 | 0-pad] -> (Bp, K).
    ones = jnp.ones((B, 1), jnp.float32)
    h_aug = jnp.concatenate(
        [h.astype(jnp.float32), x.astype(jnp.float32), ones], axis=1)
    h_aug = jnp.pad(h_aug, ((0, Bp - B), (0, K - (H + 2))))

    vmem = pl.BlockSpec(memory_space=pltpu.MemorySpace.VMEM)
    out_p = pl.pallas_call(
        functools.partial(gru_cell_kernel, Hp=Hp),
        out_shape=jax.ShapeDtypeStruct((Bp, Hp), jnp.float32),
        in_specs=[vmem, vmem],
        out_specs=vmem,
    )(h_aug, w_aug)

    return out_p[:B, :H]


def gru_reference(x, h, w_ih, w_hh, b_ih, b_hh):
    """Plain-JAX reference matching torch.nn.GRUCell."""
    H = h.shape[-1]
    gx = x @ w_ih.T + b_ih
    gh = h @ w_hh.T + b_hh
    r = jax.nn.sigmoid(gx[:, 0:H] + gh[:, 0:H])
    z = jax.nn.sigmoid(gx[:, H:2 * H] + gh[:, H:2 * H])
    n = jnp.tanh(gx[:, 2 * H:3 * H] + r * gh[:, 2 * H:3 * H])
    return (1.0 - z) * n + z * h


if __name__ == "__main__":
    B = 2          # batch
    H = 32         # hidden_size
    IN = 1         # GRUCell input_size (fixed by the module)

    key = jax.random.PRNGKey(0)
    kx, kh, k1, k2, k3, k4 = jax.random.split(key, 6)

    # Deterministic parameter init matching PyTorch's U(-1/sqrt(H), 1/sqrt(H)).
    bound = 1.0 / (H ** 0.5)
    w_ih = jax.random.uniform(k1, (3 * H, IN), jnp.float32, -bound, bound)
    w_hh = jax.random.uniform(k2, (3 * H, H), jnp.float32, -bound, bound)
    b_ih = jax.random.uniform(k3, (3 * H,), jnp.float32, -bound, bound)
    b_hh = jax.random.uniform(k4, (3 * H,), jnp.float32, -bound, bound)

    x = jax.random.normal(kx, (B, IN), jnp.float32)
    h = jax.random.normal(kh, (B, H), jnp.float32)

    # Weight prep happens ONCE (outside any decode loop).
    params = prepare_gru_params(w_ih, w_hh, b_ih, b_hh)

    out = gru_decoder_cell(x, h, params)
    out = jax.block_until_ready(out)

    ref = gru_reference(x, h, w_ih, w_hh, b_ih, b_hh)
    assert out.shape == (B, H)
    assert jnp.allclose(out, ref, atol=1e-5, rtol=1e-5), (
        float(jnp.max(jnp.abs(out - ref))))

    print("KERNEL_OK")
</pallas_src>

<mosaic_0001>
module attributes {stable_mosaic.version = 11 : i64} {
  func.func @gru_cell_kernel(%arg0: memref<8x128xf32, #tpu.memory_space<vmem>>, %arg1: memref<128x512xf32, #tpu.memory_space<vmem>>, %arg2: memref<8x128xf32, #tpu.memory_space<vmem>>) attributes {dimension_semantics = [], scalar_prefetch = 0 : i64, scratch_operands = 0 : i64, tpu.core_type = #tpu.core_type<tc>} {
    %c0 = arith.constant 0 : index
    %c0_0 = arith.constant 0 : index
    %0 = vector.load %arg0[%c0, %c0_0] : memref<8x128xf32, #tpu.memory_space<vmem>>, vector<8x128xf32>
    %c0_1 = arith.constant 0 : index
    %c0_2 = arith.constant 0 : index
    %1 = vector.load %arg1[%c0_1, %c0_2] : memref<128x512xf32, #tpu.memory_space<vmem>>, vector<128x512xf32>
    %cst = arith.constant dense<0.000000e+00> : vector<8x512xf32>
    %2 = tpu.matmul %0, %1, %cst {dimension_numbers = #tpu.dot_dimension_numbers<[1], [0], [0], [1], [0, 0, 1, 1], [], []>} : vector<8x128xf32>, vector<128x512xf32>, vector<8x512xf32> -> vector<8x512xf32>
    %3 = vector.extract_strided_slice %2 {offsets = [0, 0], sizes = [8, 128], strides = [1, 1]} : vector<8x512xf32> to vector<8x128xf32>
    %4 = arith.negf %3 : vector<8x128xf32>
    %5 = math.exp %4 : vector<8x128xf32>
    %cst_3 = arith.constant 1.000000e+00 : f32
    %6 = vector.broadcast %cst_3 : f32 to vector<8x128xf32>
    %7 = arith.addf %6, %5 : vector<8x128xf32>
    %8 = arith.divf %6, %7 : vector<8x128xf32>
    %9 = vector.extract_strided_slice %2 {offsets = [0, 128], sizes = [8, 128], strides = [1, 1]} : vector<8x512xf32> to vector<8x128xf32>
    %10 = arith.negf %9 : vector<8x128xf32>
    %11 = math.exp %10 : vector<8x128xf32>
    %cst_4 = arith.constant 1.000000e+00 : f32
    %12 = vector.broadcast %cst_4 : f32 to vector<8x128xf32>
    %13 = arith.addf %12, %11 : vector<8x128xf32>
    %14 = arith.divf %12, %13 : vector<8x128xf32>
    %15 = vector.extract_strided_slice %2 {offsets = [0, 384], sizes = [8, 128], strides = [1, 1]} : vector<8x512xf32> to vector<8x128xf32>
    %16 = vector.extract_strided_slice %2 {offsets = [0, 256], sizes = [8, 128], strides = [1, 1]} : vector<8x512xf32> to vector<8x128xf32>
    %17 = arith.mulf %8, %16 : vector<8x128xf32>
    %18 = arith.addf %15, %17 : vector<8x128xf32>
    %19 = math.tanh %18 : vector<8x128xf32>
    %20 = arith.subf %0, %19 : vector<8x128xf32>
    %21 = arith.mulf %14, %20 : vector<8x128xf32>
    %22 = arith.addf %19, %21 : vector<8x128xf32>
    %c0_5 = arith.constant 0 : index
    %c0_6 = arith.constant 0 : index
    %23 = vector.load %arg2[%c0_5, %c0_6] : memref<8x128xf32, #tpu.memory_space<vmem>>, vector<8x128xf32>
    tpu.vector_store %arg2[%c0_5, %c0_6], %22 {strides = array<i32>} : memref<8x128xf32, #tpu.memory_space<vmem>>, vector<8x128xf32>,
    return
  }
}

</mosaic_0001>

<bundles_post_ra>
// kernel: gru_decoder_cell.1
= control target key start
LH: loop header
LB: loop body
LE: loop exit
PB: predicated region body
PF: predicated region fallthrough
CT: control target
= control target key end

     0   :  { %7 = vsyncpa [#allocation3], 0  ;;  %s360_s9 = smov [#allocation2]   ;;  %s397_s0 = inlined_call_operand.vmem [shape: f32[8,128], index: 0, kind: input, shape index: {}]   ;;  %s398_s1 = inlined_call_operand.hbm [shape: f32[128,512], index: 1, kind: input, shape index: {}]   ;;  %s399_s2 = inlined_call_operand.vmem [shape: f32[8,128], index: 2, kind: output, shape index: {}]  }
   0x1   :  { %s15_s10 = sshll.u32 %s360_s9, 4  ;;  %s336_s13 = scalar_lea.hbm %s398_s1, 8192  ;;  %s16_s10 = int_to_ptr.vmem [resolvable:$true] %s15_s10 }
   0x2   :  { %p337_p0 = scmp.ne.s32.totalorder %s398_s1, %s336_s13  ;;  %p340_p1 = scmp.lt.u32.totalorder %s336_s13, %s398_s1 }
   0x4   :  { %p342_p2 = pnand %p340_p1, %p337_p0 }
   0x6   :  { %345 = shalt.err (!%p342_p2)
}
   0x7   :  { %s346_s18 = scalar_lea.vmem %s16_s10, 8192  ;;  %p351_p4 = scmp.lt.s32.totalorder %s16_s10, %s16_s10 }
   0x8   :  { %p347_p3 = scmp.ne.s32.totalorder %s16_s10, %s346_s18  ;;  %p352_p5 = scmp.lt.s32.totalorder %s346_s18, %s346_s18 }
   0xa   :  { %p353_p6 = por %p352_p5, %p351_p4 }
   0xc   :  { %p354_p7 = pnand %p353_p6, %p347_p3 }
   0xe   :  { %357 = shalt.err (!%p354_p7)
}
   0xf   :  { %s361_s19 = smov 512   ;;  %s362_s20 = smov 32  }
  0x10   :  { %21 = dma.hbm_to_vmem [thread:$0]  %s398_s1, 8192, %s16_s10, [#allocation3], %s361_s19, %s361_s19, %s362_s20  }
  0x11   :  { %358 = dma.done.wait [#allocation3], 8192  }
  0x12   :  { %359 = vsyncadd [#allocation3], 4294959104  ;;  %v363_v0 = vmov 0.0   ;;  %v27_v1 = vld [vmem:[#allocation2 + $0x8] sm:$0xff]  ;;  %v26_v3 = vld [vmem:[#allocation2] sm:$0xff] }
  0x13   :  { %154 = vmatprep.mubr.f32.mxu0 %v363_v0  ;;  %225 = vmatprep.mubr.f32.mxu1 %v363_v0  ;;  %v31_v2 = vld [vmem:[#allocation2 + $0x28] sm:$0xff]  ;;  %v30_v5 = vld [vmem:[#allocation2 + $0x20] sm:$0xff]  ;;  %v29_v25 = vld [vmem:[#allocation2 + $0x18] sm:$0xff] }
  0x14   :  { %v258_v4 = vpack.c.bf16 %v31_v2, %v27_v1  ;;  %v35_v6 = vld [vmem:[#allocation2 + $0x48] sm:$0xff]  ;;  %v260_v8 = vpack.c.bf16 %v30_v5, %v26_v3  ;;  %v34_v10 = vld [vmem:[#allocation2 + $0x40] sm:$0xff]  ;;  %v33_v26 = vld [vmem:[#allocation2 + $0x38] sm:$0xff] }
  0x15   :  { %v39_v7 = vld [vmem:[#allocation2 + $0x68] sm:$0xff]  ;;  %v38_v11 = vld [vmem:[#allocation2 + $0x60] sm:$0xff]  ;;  %v290_v28 = vpack.c.bf16 %v33_v26, %v29_v25  ;;  %v28_v29 = vld [vmem:[#allocation2 + $0x10] sm:$0xff] }
  0x16   :  { %v262_v9 = vpack.c.bf16 %v39_v7, %v35_v6  ;;  %v43_v12 = vld [vmem:[#allocation2 + $0x88] sm:$0xff]  ;;  %259 = vmatprep.subr.bf16.mxu0 %v258_v4  ;;  %v264_v14 = vpack.c.bf16 %v38_v11, %v34_v10  ;;  %v42_v16 = vld [vmem:[#allocation2 + $0x80] sm:$0xff]  ;;  %v32_v30 = vld [vmem:[#allocation2 + $0x30] sm:$0xff] }
  0x17   :  { %v47_v13 = vld [vmem:[#allocation2 + $0xa8] sm:$0xff]  ;;  %261 = vmatpush1.bf16.msra.mxu0 %v260_v8  ;;  %v46_v17 = vld [vmem:[#allocation2 + $0xa0] sm:$0xff]  ;;  %v292_v33 = vpack.c.bf16 %v32_v30, %v28_v29  ;;  %291 = vmatprep.subr.bf16.mxu1 %v290_v28  ;;  %v37_v36 = vld [vmem:[#allocation2 + $0x58] sm:$0xff] }
  0x18   :  { %263 = vmatprep.subr.bf16.mxu0 %v262_v9  ;;  %v266_v15 = vpack.c.bf16 %v47_v13, %v43_v12  ;;  %v51_v18 = vld [vmem:[#allocation2 + $0xc8] sm:$0xff]  ;;  %v268_v20 = vpack.c.bf16 %v46_v17, %v42_v16  ;;  %v50_v21 = vld [vmem:[#allocation2 + $0xc0] sm:$0xff]  ;;  %v41_v37 = vld [vmem:[#allocation2 + $0x78] sm:$0xff] }
  0x19   :  { %v55_v19 = vld [vmem:[#allocation2 + $0xe8] sm:$0xff]  ;;  %v54_v22 = vld [vmem:[#allocation2 + $0xe0] sm:$0xff]  ;;  %v36_v38 = vld [vmem:[#allocation2 + $0x50] sm:$0xff]  ;;  %293 = vmatpush1.bf16.msra.mxu1 %v292_v33  ;;  %v294_v41 = vpack.c.bf16 %v41_v37, %v37_v36 }
  0x1a   :  { %v270_v23 = vpack.c.bf16 %v55_v19, %v51_v18  ;;  %v59_v24 = vld [vmem:[#allocation2 + $0x108] sm:$0xff]  ;;  %v58_v31 = vld [vmem:[#allocation2 + $0x100] sm:$0xff]  ;;  %v272_v34 = vpack.c.bf16 %v54_v22, %v50_v21  ;;  %v40_v42 = vld [vmem:[#allocation2 + $0x70] sm:$0xff] }
  0x1b   :  { %265 = vmatpush1.bf16.msra.mxu0 %v264_v14  ;;  %v63_v27 = vld [vmem:[#allocation2 + $0x128] sm:$0xff]  ;;  %v62_v32 = vld [vmem:[#allocation2 + $0x120] sm:$0xff]  ;;  %v45_v43 = vld [vmem:[#allocation2 + $0x98] sm:$0xff]  ;;  %v296_v44 = vpack.c.bf16 %v40_v42, %v36_v38  ;;  %295 = vmatprep.subr.bf16.mxu1 %v294_v41 }
  0x1c   :  { %267 = vmatprep.subr.bf16.mxu0 %v266_v15  ;;  %v67_v35 = vld [vmem:[#allocation2 + $0x148] sm:$0xff]  ;;  %v274_v39 = vpack.c.bf16 %v63_v27, %v59_v24  ;;  %v49_v45 = vld [vmem:[#allocation2 + $0xb8] sm:$0xff]  ;;  %v44_v46 = vld [vmem:[#allocation2 + $0x90] sm:$0xff]  ;;  %v276_v51 = vpack.c.bf16 %v62_v32, %v58_v31 }
  0x1d   :  { %v71_v40 = vld [vmem:[#allocation2 + $0x168] sm:$0xff]  ;;  %v48_v47 = vld [vmem:[#allocation2 + $0xb0] sm:$0xff]  ;;  %v298_v48 = vpack.c.bf16 %v49_v45, %v45_v43  ;;  %v53_v49 = vld [vmem:[#allocation2 + $0xd8] sm:$0xff]  ;;  %297 = vmatpush1.bf16.msra.mxu1 %v296_v44 }
  0x1e   :  { %v57_v50 = vld [vmem:[#allocation2 + $0xf8] sm:$0xff]  ;;  %v278_v52 = vpack.c.bf16 %v71_v40, %v67_v35  ;;  %v66_v53 = vld [vmem:[#allocation2 + $0x140] sm:$0xff]  ;;  %v75_v55 = vld [vmem:[#allocation2 + $0x188] sm:$0xff]  ;;  %v300_v56 = vpack.c.bf16 %v48_v47, %v44_v46 }
  0x1f   :  { %269 = vmatpush1.bf16.msra.mxu0 %v268_v20  ;;  %v70_v54 = vld [vmem:[#allocation2 + $0x160] sm:$0xff]  ;;  %v79_v57 = vld [vmem:[#allocation2 + $0x1a8] sm:$0xff]  ;;  %299 = vmatprep.subr.bf16.mxu1 %v298_v48  ;;  %v302_v58 = vpack.c.bf16 %v57_v50, %v53_v49  ;;  %v52_v59 = vld [vmem:[#allocation2 + $0xd0] sm:$0xff] }
  0x20   :  { %271 = vmatprep.subr.bf16.mxu0 %v270_v23  ;;  %v56_v60 = vld [vmem:[#allocation2 + $0xf0] sm:$0xff]  ;;  %v61_v61 = vld [vmem:[#allocation2 + $0x118] sm:$0xff]  ;;  %v280_v63 = vpack.c.bf16 %v70_v54, %v66_v53  ;;  %v282_v0 = vpack.c.bf16 %v79_v57, %v75_v55  ;;  %v74_v1 = vld [vmem:[#allocation2 + $0x180] sm:$0xff] }
  0x21   :  { %v65_v62 = vld [vmem:[#allocation2 + $0x138] sm:$0xff]  ;;  %v78_v2 = vld [vmem:[#allocation2 + $0x1a0] sm:$0xff]  ;;  %v83_v3 = vld [vmem:[#allocation2 + $0x1c8] sm:$0xff]  ;;  %301 = vmatpush1.bf16.msra.mxu1 %v300_v56  ;;  %v304_v4 = vpack.c.bf16 %v56_v60, %v52_v59 }
  0x22   :  { %v87_v5 = vld [vmem:[#allocation2 + $0x1e8] sm:$0xff]  ;;  %303 = vmatprep.subr.bf16.mxu1 %v302_v58  ;;  %v306_v6 = vpack.c.bf16 %v65_v62, %v61_v61  ;;  %v60_v7 = vld [vmem:[#allocation2 + $0x110] sm:$0xff]  ;;  %v69_v9 = vld [vmem:[#allocation2 + $0x158] sm:$0xff]  ;;  %v284_v11 = vpack.c.bf16 %v78_v2, %v74_v1 }
  0x23   :  { %273 = vmatpush1.bf16.msra.mxu0 %v272_v34  ;;  %v64_v8 = vld [vmem:[#allocation2 + $0x130] sm:$0xff]  ;;  %v73_v10 = vld [vmem:[#allocation2 + $0x178] sm:$0xff]  ;;  %v286_v12 = vpack.c.bf16 %v87_v5, %v83_v3  ;;  %v82_v13 = vld [vmem:[#allocation2 + $0x1c0] sm:$0xff] }
  0x24   :  { %275 = vmatprep.subr.bf16.mxu0 %v274_v39  ;;  %v86_v14 = vld [vmem:[#allocation2 + $0x1e0] sm:$0xff]  ;;  %v308_v15 = vpack.c.bf16 %v64_v8, %v60_v7  ;;  %v310_v16 = vpack.c.bf16 %v73_v10, %v69_v9  ;;  %v68_v17 = vld [vmem:[#allocation2 + $0x150] sm:$0xff]  ;;  %v77_v19 = vld [vmem:[#allocation2 + $0x198] sm:$0xff] }
  0x25   :  { %305 = vmatpush1.bf16.msra.mxu1 %v304_v4  ;;  %v72_v18 = vld [vmem:[#allocation2 + $0x170] sm:$0xff]  ;;  %v81_v20 = vld [vmem:[#allocation2 + $0x1b8] sm:$0xff]  ;;  %v288_v21 = vpack.c.bf16 %v86_v14, %v82_v13  ;;  %v25_v28 = vld [vmem:[%s397_s0] sm:$0xff] }
  0x26   :  { %307 = vmatprep.subr.bf16.mxu1 %v306_v6  ;;  %v312_v22 = vpack.c.bf16 %v72_v18, %v68_v17  ;;  %v314_v23 = vpack.c.bf16 %v81_v20, %v77_v19  ;;  %v76_v24 = vld [vmem:[#allocation2 + $0x190] sm:$0xff]  ;;  %v85_v26 = vld [vmem:[#allocation2 + $0x1d8] sm:$0xff] }
  0x27   :  { %277 = vmatpush1.bf16.msra.mxu0 %v276_v51  ;;  %v80_v25 = vld [vmem:[#allocation2 + $0x1b0] sm:$0xff]  ;;  %v89_v27 = vld [vmem:[#allocation2 + $0x1f8] sm:$0xff] }
  0x28   :  { %279 = vmatprep.subr.bf16.mxu0 %v278_v52  ;;  %v316_v29 = vpack.c.bf16 %v80_v25, %v76_v24  ;;  %v318_v30 = vpack.c.bf16 %v89_v27, %v85_v26  ;;  %v84_v31 = vld [vmem:[#allocation2 + $0x1d0] sm:$0xff] }
  0x29   :  { %309 = vmatpush1.bf16.msra.mxu1 %v308_v15  ;;  %v88_v32 = vld [vmem:[#allocation2 + $0x1f0] sm:$0xff] }
  0x2a   :  { %311 = vmatprep.subr.bf16.mxu1 %v310_v16  ;;  %v320_v33 = vpack.c.bf16 %v88_v32, %v84_v31 }
  0x2b   :  { %281 = vmatpush1.bf16.msra.mxu0 %v280_v63 }
  0x2c   :  { %283 = vmatprep.subr.bf16.mxu0 %v282_v0 }
  0x2d   :  { %313 = vmatpush1.bf16.msra.mxu1 %v312_v22 }
  0x2e   :  { %315 = vmatprep.subr.bf16.mxu1 %v314_v23 }
  0x2f   :  { %285 = vmatpush1.bf16.msra.mxu0 %v284_v11 }
  0x30   :  { %287 = vmatprep.subr.bf16.mxu0 %v286_v12 }
  0x31   :  { %317 = vmatpush1.bf16.msra.mxu1 %v316_v29 }
  0x32   :  { %319 = vmatprep.subr.bf16.mxu1 %v318_v30 }
  0x33   :  { %289 = vmatpush1.bf16.msra.mxu0 %v288_v21 }
  0x35   :  { %321 = vmatpush1.bf16.msra.mxu1 %v320_v33 }
  0x36   :  { %155 = vmatmul.mubr.f32.vlgmr.msra.gmra.mrb[0].mxu0 %v25_v28 }
  0x38   :  { %226 = vmatmul.mubr.f32.vlgmr.msra.gmra.mrb[0].mxu1 %v25_v28 }
 0x109   :  { %v156_v34 = vpop.f32.mrb[0].mxu0 }
 0x10a   :  { %v256_v35 = vmul.f32 -1.442695, %v156_v34  ;;  %v158_v36 = vpop.f32.mrb[1].mxu0 }
 0x10b   :  { %v227_v37 = vpop.f32.mrb[0].mxu1  ;;  %v257_v39 = vmul.f32 -1.442695, %v158_v36 }
 0x10c   :  { %326 = vpow2.f32 %v256_v35  ;;  %v229_v38 = vpop.f32.mrb[1].mxu1 }
 0x10d   :  { %328 = vpow2.f32 %v257_v39 }
 0x116   :  { %v327_v40 = vpop.eup %326 }
 0x117   :  { %v235_v41 = vadd.f32 1.0, %v327_v40  ;;  %v329_v42 = vpop.eup %328 }
 0x118   :  { %v241_v45 = vadd.f32 1.0, %v329_v42 }
 0x119   :  { %330 = vrcp.f32 %v235_v41 }
 0x123   :  { %v331_v43 = vpop.eup %330 }
 0x124   :  { %v244_v44 = vmul.f32 %v331_v43, %v227_v37 }
 0x126   :  { %v245_v46 = vadd.f32 %v244_v44, %v229_v38 }
 0x128   :  { %332 = vtanh.f32 %v245_v46 }
 0x129   :  { %334 = vrcp.f32 %v241_v45 }
 0x132   :  { %v333_v47 = vpop.eup %332 }
 0x133   :  { %v247_v48 = vsub.f32 %v25_v28, %v333_v47  ;;  %v335_v49 = vpop.eup %334 }
 0x135   :  { %v248_v50 = vmul.f32 %v335_v49, %v247_v48 }
 0x137   :  { %v249_v51 = vadd.f32 %v333_v47, %v248_v50 }
 0x139   :  { %250 = vst [vmem:[%s399_s2] sm:$0xff] %v249_v51 }
 0x13a   :  { %255 = vsyncpa [#allocation3], 1 }

</bundles_post_ra>
